<compile_context>
chip_gen: v7x
topology: tpu7x:2x2x1
jax: 0.10.0
libtpu: 0.0.40
codegen_flags: <defaults>
</compile_context>

<pallas_src>
import functools
import math

import jax
import jax.numpy as jnp
from jax.experimental import pallas as pl
from jax.experimental.pallas import tpu as pltpu

LANE = 128
NEG_INF = -1e30


def _round_up(x, m):
    return (x + m - 1) // m * m


def _pick_block(n_pad, target):
    """Largest multiple of 128 that divides n_pad and is <= target."""
    b = min(_round_up(target, LANE), n_pad)
    b = (b // LANE) * LANE
    while n_pad % b:
        b -= LANE
    return b


# ---------------------------------------------------------------------------
# Kernel A: per-node projection + fused attention-logit projections.
#   xp = h @ W^T                       [tm, H*C (lane padded)]   (emitted bf16)
#   sd = xp @ [att_src | att_dst]      [tm, 2H]  (a_src | a_dst)
# ---------------------------------------------------------------------------
def projection_kernel(h_ref, wt_ref, att_ref, xp_ref, sd_ref):
    xp = jnp.dot(h_ref[...], wt_ref[...], preferred_element_type=jnp.float32)
    xp_ref[...] = xp.astype(xp_ref.dtype)                      # bf16 for kernel B
    sd_ref[...] = jnp.dot(xp, att_ref[...], preferred_element_type=jnp.float32)


# ---------------------------------------------------------------------------
# Kernel B: attention aggregation.
# grid = (row blocks i [parallel], source blocks k [arbitrary])
# Softmax shift m is a precomputed per-(row, head) upper bound, so no running
# max / rescaling; denominator + weighted sum both come from MXU matmuls.
# ---------------------------------------------------------------------------
def attention_kernel(*refs, heads, out_ch, concat, residual_kind,
                     negative_slope, apply_act, block_s, xp_resident):
    a_ref, rv_ref, asrcT_ref, xp_ref, bias_ref = refs[:5]
    idx = 5
    headmix_ref = None
    if not concat:
        headmix_ref = refs[idx]; idx += 1
    hin_ref = wres_ref = None
    if residual_kind != "none":
        hin_ref = refs[idx]; idx += 1
    if residual_kind == "linear":
        wres_ref = refs[idx]; idx += 1
    o_ref = refs[idx]
    l_ref, acc_ref = refs[idx + 1], refs[idx + 2]

    k = pl.program_id(1)
    C = out_ch

    @pl.when(k == 0)
    def _init():
        l_ref[...] = jnp.zeros_like(l_ref)
        acc_ref[...] = jnp.zeros_like(acc_ref)

    a_cnt = a_ref[...].astype(jnp.float32)                     # [tm, tk] edge counts
    tk = a_cnt.shape[1]
    ones_col = jnp.ones((tk, 1), jnp.bfloat16)                 # denominator via MXU

    if xp_resident:
        src0 = pl.multiple_of(k * block_s, LANE)

    def xp_cols(lo, hi):
        if xp_resident:
            return xp_ref[pl.ds(src0, block_s), lo:hi]
        return xp_ref[:, lo:hi]

    for h in range(heads):                                     # unrolled, heads is small
        adst_h = rv_ref[:, h:h + 1]                            # [tm, 1]
        m_h = rv_ref[:, heads + h:heads + h + 1]               # per-row logit bound
        logit = adst_h + asrcT_ref[h:h + 1, :]                 # [tm, tk]
        logit = jnp.where(logit > 0, logit, negative_slope * logit)   # LeakyReLU
        # a_cnt == 0 zeroes non-edges; m_h >= every logit so exp <= 1 (no mask).
        p = (a_cnt * jnp.exp(logit - m_h)).astype(jnp.bfloat16)
        acc_ref[:, h * C:(h + 1) * C] += jnp.dot(
            p, xp_cols(h * C, (h + 1) * C), preferred_element_type=jnp.float32)
        l_ref[:, h:h + 1] += jnp.dot(p, ones_col, preferred_element_type=jnp.float32)

    @pl.when(k == pl.num_programs(1) - 1)
    def _finalize():
        acc = acc_ref[...]                                     # [tm, hc_p]
        hc_p = acc.shape[-1]
        linv = 1.0 / l_ref[...]                                # [tm, heads]
        col_head = jax.lax.broadcasted_iota(jnp.int32, (1, hc_p), 1) // C
        inv = jnp.zeros_like(acc)
        for h in range(heads):
            inv = inv + linv[:, h:h + 1] * (col_head == h).astype(jnp.float32)
        out = acc * inv                                        # padded cols stay 0
        if not concat:
            out = jnp.dot(out, headmix_ref[...], preferred_element_type=jnp.float32)
        out = out + bias_ref[...]
        if residual_kind == "identity":
            out = out + hin_ref[...]
        elif residual_kind == "linear":
            out = out + jnp.dot(hin_ref[...], wres_ref[...],
                                preferred_element_type=jnp.float32)
        if apply_act:
            out = jnp.maximum(out, 0.0)                        # ReLU
        o_ref[...] = out.astype(o_ref.dtype)


# ---------------------------------------------------------------------------
# One GATConv layer (+ module-level residual / activation): two pallas_calls.
# ---------------------------------------------------------------------------
def gat_conv_layer(adj, h, layer, *, negative_slope, block_t, block_s,
                   force_stream_xp=False):
    n_pad, din_p = h.shape
    heads, C = layer["heads"], layer["out_ch"]
    hc_p, out_w_p = layer["hc_p"], layer["out_w_p"]
    concat, rk = layer["concat"], layer["residual_kind"]

    # ---- kernel A: projection + fused (a_src | a_dst) logits ----
    block_a = _pick_block(n_pad, 512)
    xp, sd = pl.pallas_call(
        projection_kernel,
        out_shape=(jax.ShapeDtypeStruct((n_pad, hc_p), jnp.bfloat16),
                   jax.ShapeDtypeStruct((n_pad, 2 * heads), jnp.float32)),
        grid_spec=pltpu.PrefetchScalarGridSpec(
            num_scalar_prefetch=0,
            grid=(n_pad // block_a,),
            in_specs=[
                pl.BlockSpec((block_a, din_p), lambda i: (i, 0)),
                pl.BlockSpec((din_p, hc_p), lambda i: (0, 0)),
                pl.BlockSpec((hc_p, 2 * heads), lambda i: (0, 0)),
            ],
            out_specs=[
                pl.BlockSpec((block_a, hc_p), lambda i: (i, 0)),
                pl.BlockSpec((block_a, 2 * heads), lambda i: (i, 0)),
            ]),
        compiler_params=pltpu.CompilerParams(dimension_semantics=("parallel",)),
    )(h, layer["wt_p"], layer["att_mat"])

    # Tiny glue on [n_pad, heads] arrays: global per-head a_src bound ->
    # per-(row, head) logit upper bound m (replaces the in-kernel running max).
    a_src, a_dst = sd[:, :heads], sd[:, heads:]
    z = a_dst + jnp.max(a_src, axis=0, keepdims=True)
    m = jnp.where(z > 0.0, z, negative_slope * z)
    rowvals = jnp.concatenate([a_dst, m], axis=1)              # [n_pad, 2H]
    a_srcT = a_src.T                                           # [H, n_pad]

    xp_bytes = n_pad * hc_p * 2
    # Keep x_proj fully VMEM-resident when it comfortably fits (conservative for
    # v7x's 64 MiB VMEM); otherwise stream a (block_s, hc_p) bf16 slab per k.
    xp_resident = (not force_stream_xp) and xp_bytes <= (24 << 20)

    in_specs = [
        pl.BlockSpec((block_t, block_s), lambda i, k: (i, k)),     # int8 adjacency
        pl.BlockSpec((block_t, 2 * heads), lambda i, k: (i, 0)),   # [a_dst | m]
        pl.BlockSpec((heads, block_s), lambda i, k: (0, k)),       # a_src^T
        (pl.BlockSpec((n_pad, hc_p), lambda i, k: (0, 0)) if xp_resident
         else pl.BlockSpec((block_s, hc_p), lambda i, k: (k, 0))),  # x_proj (bf16)
        pl.BlockSpec((1, out_w_p), lambda i, k: (0, 0)),           # bias
    ]
    args = [adj, rowvals, a_srcT, xp, layer["bias_p"]]
    if not concat:
        in_specs.append(pl.BlockSpec((hc_p, out_w_p), lambda i, k: (0, 0)))
        args.append(layer["headmix_p"])
    if rk != "none":
        in_specs.append(pl.BlockSpec((block_t, din_p), lambda i, k: (i, 0)))
        args.append(h)
    if rk == "linear":
        in_specs.append(pl.BlockSpec((din_p, out_w_p), lambda i, k: (0, 0)))
        args.append(layer["wres_t_p"])

    kernel = functools.partial(
        attention_kernel, heads=heads, out_ch=C, concat=concat, residual_kind=rk,
        negative_slope=negative_slope, apply_act=layer["apply_act"],
        block_s=block_s, xp_resident=xp_resident)

    n_row_blocks = n_pad // block_t
    xp_stream = xp_bytes if xp_resident else n_row_blocks * n_pad * hc_p * 2
    bytes_accessed = int(
        n_pad * n_pad                                     # int8 adjacency
        + xp_stream                                       # x_proj (resident or re-streamed)
        + n_pad * out_w_p * 4                             # output
        + (n_pad * din_p * 4 if rk != "none" else 0)      # residual input
        + n_pad * 2 * heads * 4 + heads * n_pad * 4)      # rowvals + a_src^T
    flops = int(2 * n_pad * n_pad * heads * (C + 1)       # weighted sum + denominator
                + 8 * n_pad * n_pad * heads               # logits / exp / scale
                + (2 * n_pad * din_p * out_w_p if rk == "linear" else 0)
                + (2 * n_pad * hc_p * out_w_p if not concat else 0))
    cost = pl.CostEstimate(flops=flops,
                           transcendentals=int(n_pad * n_pad * heads),
                           bytes_accessed=bytes_accessed)

    vmem_est = (
        2 * block_t * block_s                                       # adjacency (int8, 2x buf)
        + (2 * xp_bytes if xp_resident else 2 * block_s * hc_p * 2)  # x_proj
        + 2 * block_t * out_w_p * 4                                 # output
        + block_t * hc_p * 4 + block_t * LANE * 4                   # acc + l scratch
        + 2 * block_t * LANE * 4 + 2 * 8 * block_s * 4              # rowvals + a_src^T
        + 6 * block_t * block_s * 4)                                # in-kernel temporaries
    if rk != "none":
        vmem_est += 2 * block_t * din_p * 4
    if rk == "linear":
        vmem_est += 2 * din_p * out_w_p * 4
    if not concat:
        vmem_est += 2 * hc_p * out_w_p * 4
    cp_kwargs = dict(dimension_semantics=("parallel", "arbitrary"))
    if vmem_est > (12 << 20):
        # TODO(synk): re-derive this cap for v7x (64 MiB VMEM, 2 TensorCores).
        cp_kwargs["vmem_limit_bytes"] = int(min(max(vmem_est * 3 // 2, 32 << 20), 60 << 20))

    out = pl.pallas_call(
        kernel,
        out_shape=jax.ShapeDtypeStruct((n_pad, out_w_p), jnp.float32),
        grid_spec=pltpu.PrefetchScalarGridSpec(
            num_scalar_prefetch=0,
            grid=(n_pad // block_t, n_pad // block_s),
            in_specs=in_specs,
            out_specs=pl.BlockSpec((block_t, out_w_p), lambda i, k: (i, 0)),
            scratch_shapes=[
                pltpu.VMEM((block_t, heads), jnp.float32),   # softmax denominators
                pltpu.VMEM((block_t, hc_p), jnp.float32),    # weighted-sum accumulator
            ]),
        compiler_params=pltpu.CompilerParams(**cp_kwargs),
        cost_estimate=cost,
    )(*args)
    return out


# ----------------------------- glue (plain JAX) -----------------------------
def _edge_counts(edge_index, n_rows):
    """counts[t, s] = multiplicity of edge s->t after remove_self_loops + add_self_loops."""
    src, dst = edge_index[0], edge_index[1]
    keep = (src != dst).astype(jnp.int32)
    cnt = jnp.zeros((n_rows, n_rows), jnp.int32).at[dst, src].add(keep)
    return cnt + jnp.eye(n_rows, dtype=jnp.int32)


def build_adjacency(edge_index, n_pad):
    # TODO(synk): int8 clips edge multiplicities above 127 (fine for typical graphs).
    return jnp.minimum(_edge_counts(edge_index, n_pad), 127).astype(jnp.int8)


def _uniform(key, shape, scale):
    return jax.random.uniform(key, shape, jnp.float32, -scale, scale)


def _glorot(key, shape):
    fan = shape[-1] + (shape[-2] if len(shape) >= 2 else shape[-1])
    return _uniform(key, shape, math.sqrt(6.0 / fan))


def build_gat_params(key, *, in_dim, num_hidden, out_dim, num_layers,
                     nhead, nhead_out, residual, encoding, concat_out):
    """Mirrors GAT.__init__ (activation='relu', norm=None, feat/attn dropout=0)."""
    last_residual = residual if encoding else False
    cfgs = []
    if num_layers == 1:
        cfgs.append(dict(din=in_dim, out_ch=out_dim, heads=nhead_out,
                         residual=last_residual, concat=concat_out, apply_act=encoding))
    else:
        cfgs.append(dict(din=in_dim, out_ch=num_hidden, heads=nhead,
                         residual=residual, concat=True, apply_act=True))
        for _ in range(num_layers - 2):
            cfgs.append(dict(din=num_hidden * nhead, out_ch=num_hidden, heads=nhead,
                             residual=residual, concat=True, apply_act=True))
        cfgs.append(dict(din=num_hidden * nhead, out_ch=out_dim, heads=nhead_out,
                         residual=last_residual, concat=concat_out, apply_act=encoding))

    layers = []
    keys = jax.random.split(key, 5 * len(cfgs))
    for i, cfg in enumerate(cfgs):
        kw, ks, kd, kb, kr = keys[5 * i:5 * i + 5]
        din, C, H = cfg["din"], cfg["out_ch"], cfg["heads"]
        hc = H * C
        out_w = hc if cfg["concat"] else C
        w = _glorot(kw, (hc, din))                        # GATConv.lin (bias=False)
        att_src = _glorot(ks, (H, C))
        att_dst = _glorot(kd, (H, C))
        bias = _uniform(kb, (out_w,), 0.1)                # GATConv bias
        rk = ("identity" if din == out_w else "linear") if cfg["residual"] else "none"
        w_res = _glorot(kr, (out_w, din)) if rk == "linear" else None

        # padded / kernel-layout copies (built once, reused every forward)
        din_p = _round_up(din, LANE)
        hc_p = _round_up(hc, LANE)
        out_w_p = _round_up(out_w, LANE)
        wt_p = jnp.zeros((din_p, hc_p), jnp.float32).at[:din, :hc].set(w.T)
        att_mat = jnp.zeros((hc_p, 2 * H), jnp.float32)   # fused [att_src | att_dst]
        for h in range(H):
            att_mat = att_mat.at[h * C:(h + 1) * C, h].set(att_src[h])
            att_mat = att_mat.at[h * C:(h + 1) * C, H + h].set(att_dst[h])
        bias_p = jnp.zeros((1, out_w_p), jnp.float32).at[0, :out_w].set(bias)
        headmix_p = None
        if not cfg["concat"]:
            hm = jnp.zeros((hc_p, out_w_p), jnp.float32)
            for h in range(H):
                hm = hm.at[h * C + jnp.arange(C), jnp.arange(C)].set(1.0 / H)
            headmix_p = hm
        wres_t_p = None
        if rk == "linear":
            wres_t_p = jnp.zeros((din_p, out_w_p), jnp.float32).at[:din, :out_w].set(w_res.T)

        layers.append(dict(
            heads=H, out_ch=C, concat=cfg["concat"], apply_act=cfg["apply_act"],
            residual_kind=rk, din=din, out_w=out_w,
            din_p=din_p, hc_p=hc_p, out_w_p=out_w_p,
            wt_p=wt_p, att_mat=att_mat, bias_p=bias_p,
            headmix_p=headmix_p, wres_t_p=wres_t_p,
            # unpadded copies for the pure-JAX reference
            w=w, att_src=att_src, att_dst=att_dst, bias=bias, w_res=w_res))
    return layers


def gat_forward(layers, x, edge_index, *, negative_slope=0.2,
                max_block_t=512, max_block_s=1024, force_stream_xp=False):
    n, in_dim = x.shape
    n_pad = _round_up(n, LANE)
    # Bigger tiles -> fewer grid steps and fewer re-reads; tiny graphs collapse
    # to a single tile.  (For multi-block grids on v7x, an even row-block count
    # keeps both TensorCores busy.)
    block_t = _pick_block(n_pad, max_block_t)
    block_s = _pick_block(n_pad, max_block_s)
    adj = build_adjacency(edge_index, n_pad)              # int8, shared by all layers
    h = jnp.zeros((n_pad, layers[0]["din_p"]), jnp.float32).at[:n, :in_dim].set(x)
    for layer in layers:
        # feat_drop / attn_drop: eval mode -> identity; norm=None; head=Identity
        h = gat_conv_layer(adj, h, layer, negative_slope=negative_slope,
                           block_t=block_t, block_s=block_s,
                           force_stream_xp=force_stream_xp)
    return h[:n, :layers[-1]["out_w"]]


# ------------------------ pure-JAX reference (unpadded) ----------------------
def gat_reference(layers, x, edge_index, *, negative_slope=0.2):
    n = x.shape[0]
    a = _edge_counts(edge_index, n).astype(jnp.float32)
    h = x
    for L in layers:
        H, C = L["heads"], L["out_ch"]
        xp = h @ L["w"].T
        xph = xp.reshape(n, H, C)
        a_src = (xph * L["att_src"][None]).sum(-1)
        a_dst = (xph * L["att_dst"][None]).sum(-1)
        e = a_dst[:, None, :] + a_src[None, :, :]
        e = jnp.where(e > 0, e, negative_slope * e)
        e = jnp.where((a > 0)[:, :, None], e, NEG_INF)
        m = e.max(axis=1, keepdims=True)
        p = a[:, :, None] * jnp.exp(e - m)
        denom = p.sum(axis=1)
        out = jnp.einsum("tsh,shc->thc", p, xph) / denom[:, :, None]
        out = out.reshape(n, H * C) if L["concat"] else out.mean(axis=1)
        out = out + L["bias"]
        if L["residual_kind"] == "identity":
            out = out + h
        elif L["residual_kind"] == "linear":
            out = out + h @ L["w_res"].T
        if L["apply_act"]:
            out = jnp.maximum(out, 0.0)
        h = out
    return h


if __name__ == "__main__":
    key = jax.random.PRNGKey(0)
    k_x, k_e, k_p = jax.random.split(key, 3)

    N, E = 300, 1200                      # N not a multiple of 128 -> exercises padding
    in_dim, num_hidden, out_dim = 48, 32, 16
    num_layers, nhead, nhead_out = 3, 4, 1

    x = jax.random.normal(k_x, (N, in_dim), jnp.float32)
    edge_index = jax.random.randint(k_e, (2, E), 0, N, jnp.int32)

    # encoding=True so every layer has residual + activation (residual=True with
    # encoding=False is broken in the upstream module).
    layers = build_gat_params(k_p, in_dim=in_dim, num_hidden=num_hidden,
                              out_dim=out_dim, num_layers=num_layers,
                              nhead=nhead, nhead_out=nhead_out,
                              residual=True, encoding=True, concat_out=False)

    ref = gat_reference(layers, x, edge_index)

    # 1) default config: single big tile, VMEM-resident bf16 x_proj
    out = jax.block_until_ready(gat_forward(layers, x, edge_index))
    # 2) multi-block grid + streamed-x_proj path (online accumulation across k)
    out_tiled = jax.block_until_ready(
        gat_forward(layers, x, edge_index,
                    max_block_t=128, max_block_s=128, force_stream_xp=True))

    assert out.shape == (N, out_dim) and out_tiled.shape == (N, out_dim)
    assert bool(jnp.all(jnp.isfinite(out))) and bool(jnp.all(jnp.isfinite(out_tiled)))
    # bf16 x_proj / attention weights (perf-review item) bound agreement with the
    # fp32 reference to ~1e-2; accept 5e-2 worst-element and 1.5e-2 mean error.
    for o in (out, out_tiled):
        max_err = float(jnp.max(jnp.abs(o - ref)))
        mean_err = float(jnp.mean(jnp.abs(o - ref)))
        assert jnp.allclose(o, ref, atol=5e-2, rtol=5e-2), (max_err, mean_err)
        assert mean_err < 1.5e-2, mean_err

    print("KERNEL_OK")
</pallas_src>

<mosaic_0001>
module attributes {stable_mosaic.version = 11 : i64} {
  func.func @projection_kernel(%arg0: i32, %arg1: memref<384x128xf32, #tpu.memory_space<vmem>>, %arg2: memref<128x128xf32, #tpu.memory_space<vmem>>, %arg3: memref<128x8xf32, #tpu.memory_space<vmem>>, %arg4: memref<384x128xbf16, #tpu.memory_space<vmem>>, %arg5: memref<384x8xf32, #tpu.memory_space<vmem>>) attributes {dimension_semantics = [#tpu.dimension_semantics<parallel>], iteration_bounds = array<i64: 1>, scalar_prefetch = 0 : i64, scratch_operands = 0 : i64, tpu.core_type = #tpu.core_type<tc>, window_params = [{transform_indices = @transform_0, window_bounds = array<i64: 384, 128>}, {pipeline_mode = #tpu.pipeline_mode<synchronous>, transform_indices = @transform_1, window_bounds = array<i64: 128, 128>}, {pipeline_mode = #tpu.pipeline_mode<synchronous>, transform_indices = @transform_2, window_bounds = array<i64: 128, 8>}, {transform_indices = @transform_3, window_bounds = array<i64: 384, 128>}, {transform_indices = @transform_4, window_bounds = array<i64: 384, 8>}]} {
    %c0 = arith.constant 0 : index
    %c0_0 = arith.constant 0 : index
    %0 = vector.load %arg1[%c0, %c0_0] : memref<384x128xf32, #tpu.memory_space<vmem>>, vector<384x128xf32>
    %c0_1 = arith.constant 0 : index
    %c0_2 = arith.constant 0 : index
    %1 = vector.load %arg2[%c0_1, %c0_2] : memref<128x128xf32, #tpu.memory_space<vmem>>, vector<128x128xf32>
    %cst = arith.constant dense<0.000000e+00> : vector<384x128xf32>
    %2 = tpu.matmul %0, %1, %cst {dimension_numbers = #tpu.dot_dimension_numbers<[1], [0], [0], [1], [0, 0, 1, 1], [], []>} : vector<384x128xf32>, vector<128x128xf32>, vector<384x128xf32> -> vector<384x128xf32>
    %3 = arith.truncf %2 : vector<384x128xf32> to vector<384x128xbf16>
    %c0_3 = arith.constant 0 : index
    %c0_4 = arith.constant 0 : index
    %4 = vector.load %arg4[%c0_3, %c0_4] : memref<384x128xbf16, #tpu.memory_space<vmem>>, vector<384x128xbf16>
    tpu.vector_store %arg4[%c0_3, %c0_4], %3 {strides = array<i32>} : memref<384x128xbf16, #tpu.memory_space<vmem>>, vector<384x128xbf16>,
    %c0_5 = arith.constant 0 : index
    %c0_6 = arith.constant 0 : index
    %5 = vector.load %arg3[%c0_5, %c0_6] : memref<128x8xf32, #tpu.memory_space<vmem>>, vector<128x8xf32>
    %cst_7 = arith.constant dense<0.000000e+00> : vector<384x8xf32>
    %6 = tpu.matmul %2, %5, %cst_7 {dimension_numbers = #tpu.dot_dimension_numbers<[1], [0], [0], [1], [0, 0, 1, 1], [], []>} : vector<384x128xf32>, vector<128x8xf32>, vector<384x8xf32> -> vector<384x8xf32>
    %c0_8 = arith.constant 0 : index
    %c0_9 = arith.constant 0 : index
    %7 = vector.load %arg5[%c0_8, %c0_9] : memref<384x8xf32, #tpu.memory_space<vmem>>, vector<384x8xf32>
    tpu.vector_store %arg5[%c0_8, %c0_9], %6 {strides = array<i32>} : memref<384x8xf32, #tpu.memory_space<vmem>>, vector<384x8xf32>,
    return
  }
  func.func @transform_0(%arg0: i32) -> (i32, i32) {
    %c0_i32 = arith.constant 0 : i32
    %c0_i32_0 = arith.constant 0 : i32
    return %arg0, %c0_i32 : i32, i32
  }
  func.func @transform_1(%arg0: i32) -> (i32, i32) {
    %c0_i32 = arith.constant 0 : i32
    %c0_i32_0 = arith.constant 0 : i32
    %c0_i32_1 = arith.constant 0 : i32
    return %c0_i32, %c0_i32_0 : i32, i32
  }
  func.func @transform_2(%arg0: i32) -> (i32, i32) {
    %c0_i32 = arith.constant 0 : i32
    %c0_i32_0 = arith.constant 0 : i32
    %c0_i32_1 = arith.constant 0 : i32
    return %c0_i32, %c0_i32_0 : i32, i32
  }
  func.func @transform_3(%arg0: i32) -> (i32, i32) {
    %c0_i32 = arith.constant 0 : i32
    %c0_i32_0 = arith.constant 0 : i32
    return %arg0, %c0_i32 : i32, i32
  }
  func.func @transform_4(%arg0: i32) -> (i32, i32) {
    %c0_i32 = arith.constant 0 : i32
    %c0_i32_0 = arith.constant 0 : i32
    return %arg0, %c0_i32 : i32, i32
  }
}

</mosaic_0001>

<bundles_post_ra>
// kernel: tpu_custom_call.1
= control target key start
LH: loop header
LB: loop body
LE: loop exit
PB: predicated region body
PF: predicated region fallthrough
CT: control target
= control target key end

     0   :  { %10 = vsyncpa [#allocation3], 0  ;;  %s2067_s0 = inlined_call_operand.hbm [shape: f32[384,128], index: 0, kind: input, shape index: {}]   ;;  %s2068_s1 = inlined_call_operand.vmem [shape: f32[128,128], index: 1, kind: input, shape index: {}]   ;;  %s2069_s2 = inlined_call_operand.vmem [shape: f32[128,8], index: 2, kind: input, shape index: {}]   ;;  %s2070_s3 = inlined_call_operand.hbm [shape: bf16[384,128], index: 3, kind: output, shape index: {0}]   ;;  %s2071_s4 = inlined_call_operand.vmem [shape: f32[384,8], index: 4, kind: output, shape index: {1}]  }
   0x1   :  { %11 = vsyncpa [#allocation4], 0  ;;  %s1724_s15 = smov [#allocation2]   ;;  %s1676_s19 = scalar_lea.hbm %s2067_s0, 6144 }
   0x2   :  { %s17_s16 = sshll.u32 %s1724_s15, 4  ;;  %p1677_p0 = scmp.ne.s32.totalorder %s2067_s0, %s1676_s19  ;;  %s18_s16 = int_to_ptr.vmem [resolvable:$true] %s17_s16 }
   0x3   :  { %p1680_p1 = scmp.lt.u32.totalorder %s1676_s19, %s2067_s0 }
   0x5   :  { %p1682_p2 = pnand %p1680_p1, %p1677_p0 }
   0x7   :  { %1685 = shalt.err (!%p1682_p2)
}
   0x8   :  { %s1686_s24 = scalar_lea.vmem %s18_s16, 6144  ;;  %p1691_p4 = scmp.lt.s32.totalorder %s18_s16, %s18_s16 }
   0x9   :  { %p1687_p3 = scmp.ne.s32.totalorder %s18_s16, %s1686_s24  ;;  %p1692_p5 = scmp.lt.s32.totalorder %s1686_s24, %s1686_s24 }
   0xb   :  { %p1693_p6 = por %p1692_p5, %p1691_p4 }
   0xd   :  { %p1694_p7 = pnand %p1693_p6, %p1687_p3 }
   0xf   :  { %1697 = shalt.err (!%p1694_p7)
}
  0x10   :  { %s1725_s25 = smov 128   ;;  %s1726_s26 = smov 8  }
  0x11   :  { %23 = dma.hbm_to_vmem [thread:$0]  %s2067_s0, 6144, %s18_s16, [#allocation3], %s1725_s25, %s1725_s25, %s1726_s26  }
  0x12   :  { %1720 = dma.done.wait [#allocation3], 6144  }
  0x13   :  { %1721 = vsyncadd [#allocation3], 4294961152  ;;  %v79_v0 = vld [vmem:[%s2068_s1] sm:$0xff]  ;;  %v80_v1 = vld [vmem:[%s2068_s1 + $0x8] sm:$0xff] }
  0x14   :  { %v81_v2 = vld [vmem:[%s2068_s1 + $0x10] sm:$0xff]  ;;  %v1606_v3 = vpack.c.bf16 %v80_v1, %v79_v0  ;;  %v82_v4 = vld [vmem:[%s2068_s1 + $0x18] sm:$0xff]  ;;  %v83_v6 = vld [vmem:[%s2068_s1 + $0x20] sm:$0xff] }
  0x15   :  { %v1610_v5 = vpack.c.bf16 %v82_v4, %v81_v2  ;;  %v84_v7 = vld [vmem:[%s2068_s1 + $0x28] sm:$0xff]  ;;  %v31_v9 = vld [vmem:[#allocation2] sm:$0xff]  ;;  %v85_v10 = vld [vmem:[%s2068_s1 + $0x30] sm:$0xff] }
  0x16   :  { %1607 = vmatprep.subr.bf16.mxu0 %v1606_v3  ;;  %v1614_v8 = vpack.c.bf16 %v84_v7, %v83_v6  ;;  %v86_v11 = vld [vmem:[%s2068_s1 + $0x38] sm:$0xff]  ;;  %1430 = vmatprep.mubr.f32.mxu0 %v31_v9  ;;  %v87_v13 = vld [vmem:[%s2068_s1 + $0x40] sm:$0xff]  ;;  %v88_v14 = vld [vmem:[%s2068_s1 + $0x48] sm:$0xff] }
  0x17   :  { %1609 = vmatpush3.bf16.msra.mxu0 %v1606_v3  ;;  %v1618_v12 = vpack.c.bf16 %v86_v11, %v85_v10  ;;  %v1622_v15 = vpack.c.bf16 %v88_v14, %v87_v13  ;;  %v89_v16 = vld [vmem:[%s2068_s1 + $0x50] sm:$0xff]  ;;  %v90_v17 = vld [vmem:[%s2068_s1 + $0x58] sm:$0xff]  ;;  %v91_v19 = vld [vmem:[%s2068_s1 + $0x60] sm:$0xff] }
  0x18   :  { %1611 = vmatprep.subr.bf16.mxu0 %v1610_v5  ;;  %v1626_v18 = vpack.c.bf16 %v90_v17, %v89_v16  ;;  %v92_v20 = vld [vmem:[%s2068_s1 + $0x68] sm:$0xff]  ;;  %v93_v22 = vld [vmem:[%s2068_s1 + $0x70] sm:$0xff]  ;;  %v640_v23 = vld [vmem:[%s2069_s2] sm:$0xff] }
  0x19   :  { %v1630_v21 = vpack.c.bf16 %v92_v20, %v91_v19  ;;  %v641_v24 = vld [vmem:[%s2069_s2 + $0x8] sm:$0xff]  ;;  %v94_v25 = vld [vmem:[%s2068_s1 + $0x78] sm:$0xff]  ;;  %v642_v27 = vld [vmem:[%s2069_s2 + $0x10] sm:$0xff] }
  0x1a   :  { %v1638_v26 = vpack.c.bf16 %v641_v24, %v640_v23  ;;  %v643_v28 = vld [vmem:[%s2069_s2 + $0x18] sm:$0xff]  ;;  %v644_v30 = vld [vmem:[%s2069_s2 + $0x20] sm:$0xff]  ;;  %v645_v31 = vld [vmem:[%s2069_s2 + $0x28] sm:$0xff]  ;;  %v1634_v32 = vpack.c.bf16 %v94_v25, %v93_v22 }
  0x1b   :  { %1613 = vmatpush3.bf16.msra.mxu0 %v1610_v5  ;;  %v1642_v29 = vpack.c.bf16 %v643_v28, %v642_v27  ;;  %v1646_v33 = vpack.c.bf16 %v645_v31, %v644_v30  ;;  %v646_v34 = vld [vmem:[%s2069_s2 + $0x30] sm:$0xff]  ;;  %v647_v35 = vld [vmem:[%s2069_s2 + $0x38] sm:$0xff]  ;;  %v648_v37 = vld [vmem:[%s2069_s2 + $0x40] sm:$0xff] }
  0x1c   :  { %1615 = vmatprep.subr.bf16.mxu0 %v1614_v8  ;;  %1639 = vmatprep.subr.bf16.mxu1 %v1638_v26  ;;  %v1650_v36 = vpack.c.bf16 %v647_v35, %v646_v34  ;;  %v649_v38 = vld [vmem:[%s2069_s2 + $0x48] sm:$0xff]  ;;  %v33_v40 = vld [vmem:[#allocation2 + $0x10] sm:$0xff]  ;;  %v651_v43 = vld [vmem:[%s2069_s2 + $0x58] sm:$0xff] }
  0x1d   :  { %1641 = vmatpush3.bf16.msra.mxu1 %v1638_v26  ;;  %v32_v39 = vld [vmem:[#allocation2 + $0x8] sm:$0xff]  ;;  %v1654_v41 = vpack.c.bf16 %v649_v38, %v648_v37  ;;  %v650_v42 = vld [vmem:[%s2069_s2 + $0x50] sm:$0xff]  ;;  %v34_v44 = vld [vmem:[#allocation2 + $0x18] sm:$0xff] }
  0x1e   :  { %1643 = vmatprep.subr.bf16.mxu1 %v1642_v29  ;;  %v35_v45 = vld [vmem:[#allocation2 + $0x20] sm:$0xff]  ;;  %v1658_v46 = vpack.c.bf16 %v651_v43, %v650_v42  ;;  %v653_v48 = vld [vmem:[%s2069_s2 + $0x68] sm:$0xff]  ;;  %v37_v50 = vld [vmem:[#allocation2 + $0x30] sm:$0xff] }
  0x1f   :  { %1617 = vmatpush3.bf16.msra.mxu0 %v1614_v8  ;;  %v652_v47 = vld [vmem:[%s2069_s2 + $0x60] sm:$0xff]  ;;  %v36_v49 = vld [vmem:[#allocation2 + $0x28] sm:$0xff]  ;;  %v654_v52 = vld [vmem:[%s2069_s2 + $0x70] sm:$0xff] }
  0x20   :  { %1619 = vmatprep.subr.bf16.mxu0 %v1618_v12  ;;  %v1662_v51 = vpack.c.bf16 %v653_v48, %v652_v47  ;;  %v655_v53 = vld [vmem:[%s2069_s2 + $0x78] sm:$0xff]  ;;  %v39_v55 = vld [vmem:[#allocation2 + $0x40] sm:$0xff]  ;;  %v40_v57 = vld [vmem:[#allocation2 + $0x48] sm:$0xff]  ;;  %s1727_s2 = smov [#allocation5]  }
  0x21   :  { %1645 = vmatpush3.bf16.msra.mxu1 %v1642_v29  ;;  %v38_v54 = vld [vmem:[#allocation2 + $0x38] sm:$0xff]  ;;  %v1666_v56 = vpack.c.bf16 %v655_v53, %v654_v52  ;;  %v41_v58 = vld [vmem:[#allocation2 + $0x50] sm:$0xff]  ;;  %v43_v60 = vld [vmem:[#allocation2 + $0x60] sm:$0xff]  ;;  %s1015_s11 = sshll.u32 %s1727_s2, 4  ;;  %s1016_s11 = int_to_ptr.vmem [resolvable:$true] %s1015_s11 }
  0x22   :  { %1647 = vmatprep.subr.bf16.mxu1 %v1646_v33  ;;  %v42_v59 = vld [vmem:[#allocation2 + $0x58] sm:$0xff]  ;;  %v44_v61 = vld [vmem:[#allocation2 + $0x68] sm:$0xff]  ;;  %v45_v62 = vld [vmem:[#allocation2 + $0x70] sm:$0xff]  ;;  %s1698_s12 = scalar_lea.vmem %s1016_s11, 3072  ;;  %p1703_p9 = scmp.lt.s32.totalorder %s1016_s11, %s1016_s11 }
  0x23   :  { %1621 = vmatpush3.bf16.msra.mxu0 %v1618_v12  ;;  %v46_v63 = vld [vmem:[#allocation2 + $0x78] sm:$0xff]  ;;  %v47_v0 = vld [vmem:[#allocation2 + $0x80] sm:$0xff]  ;;  %v48_v1 = vld [vmem:[#allocation2 + $0x88] sm:$0xff]  ;;  %p1699_p8 = scmp.ne.s32.totalorder %s1016_s11, %s1698_s12  ;;  %p1704_p10 = scmp.lt.s32.totalorder %s1698_s12, %s1698_s12 }
  0x24   :  { %1623 = vmatprep.subr.bf16.mxu0 %v1622_v15  ;;  %v49_v2 = vld [vmem:[#allocation2 + $0x90] sm:$0xff]  ;;  %v50_v3 = vld [vmem:[#allocation2 + $0x98] sm:$0xff]  ;;  %v51_v4 = vld [vmem:[#allocation2 + $0xa0] sm:$0xff] }
  0x25   :  { %1649 = vmatpush3.bf16.msra.mxu1 %v1646_v33  ;;  %v52_v5 = vld [vmem:[#allocation2 + $0xa8] sm:$0xff]  ;;  %v53_v6 = vld [vmem:[#allocation2 + $0xb0] sm:$0xff]  ;;  %v54_v7 = vld [vmem:[#allocation2 + $0xb8] sm:$0xff]  ;;  %p1705_p11 = por %p1704_p10, %p1703_p9 }
  0x26   :  { %1651 = vmatprep.subr.bf16.mxu1 %v1650_v36  ;;  %v55_v8 = vld [vmem:[#allocation2 + $0xc0] sm:$0xff]  ;;  %v56_v9 = vld [vmem:[#allocation2 + $0xc8] sm:$0xff]  ;;  %v57_v10 = vld [vmem:[#allocation2 + $0xd0] sm:$0xff] }
  0x27   :  { %1625 = vmatpush3.bf16.msra.mxu0 %v1622_v15  ;;  %v58_v11 = vld [vmem:[#allocation2 + $0xd8] sm:$0xff]  ;;  %v59_v12 = vld [vmem:[#allocation2 + $0xe0] sm:$0xff]  ;;  %v60_v13 = vld [vmem:[#allocation2 + $0xe8] sm:$0xff]  ;;  %p1706_p12 = pnand %p1705_p11, %p1699_p8 }
  0x28   :  { %1627 = vmatprep.subr.bf16.mxu0 %v1626_v18  ;;  %v61_v14 = vld [vmem:[#allocation2 + $0xf0] sm:$0xff]  ;;  %v62_v15 = vld [vmem:[#allocation2 + $0xf8] sm:$0xff]  ;;  %v63_v16 = vld [vmem:[#allocation2 + $0x100] sm:$0xff] }
  0x29   :  { %1653 = vmatpush3.bf16.msra.mxu1 %v1650_v36  ;;  %v64_v17 = vld [vmem:[#allocation2 + $0x108] sm:$0xff]  ;;  %v66_v19 = vld [vmem:[#allocation2 + $0x118] sm:$0xff]  ;;  %v67_v20 = vld [vmem:[#allocation2 + $0x120] sm:$0xff] }
  0x2a   :  { %1655 = vmatprep.subr.bf16.mxu1 %v1654_v41  ;;  %v69_v22 = vld [vmem:[#allocation2 + $0x130] sm:$0xff]  ;;  %v70_v23 = vld [vmem:[#allocation2 + $0x138] sm:$0xff]  ;;  %v71_v24 = vld [vmem:[#allocation2 + $0x140] sm:$0xff] }
  0x2b   :  { %1629 = vmatpush3.bf16.msra.mxu0 %v1626_v18  ;;  %v65_v18 = vld [vmem:[#allocation2 + $0x110] sm:$0xff]  ;;  %v72_v25 = vld [vmem:[#allocation2 + $0x148] sm:$0xff]  ;;  %v74_v27 = vld [vmem:[#allocation2 + $0x158] sm:$0xff] }
  0x2c   :  { %1631 = vmatprep.subr.bf16.mxu0 %v1630_v21  ;;  %v73_v26 = vld [vmem:[#allocation2 + $0x150] sm:$0xff]  ;;  %v75_v28 = vld [vmem:[#allocation2 + $0x160] sm:$0xff]  ;;  %v76_v29 = vld [vmem:[#allocation2 + $0x168] sm:$0xff] }
  0x2d   :  { %1657 = vmatpush3.bf16.msra.mxu1 %v1654_v41  ;;  %v77_v30 = vld [vmem:[#allocation2 + $0x170] sm:$0xff]  ;;  %v78_v31 = vld [vmem:[#allocation2 + $0x178] sm:$0xff] }
  0x2e   :  { %1659 = vmatprep.subr.bf16.mxu1 %v1658_v46 }
  0x2f   :  { %1633 = vmatpush3.bf16.msra.mxu0 %v1630_v21  ;;  %v68_v21 = vld [vmem:[#allocation2 + $0x128] sm:$0xff] }
  0x30   :  { %1635 = vmatprep.subr.bf16.mxu0 %v1634_v32 }
  0x31   :  { %1661 = vmatpush3.bf16.msra.mxu1 %v1658_v46 }
  0x32   :  { %1663 = vmatprep.subr.bf16.mxu1 %v1662_v51 }
  0x33   :  { %1637 = vmatpush3.bf16.msra.mxu0 %v1634_v32 }
  0x35   :  { %1665 = vmatpush3.bf16.msra.mxu1 %v1662_v51 }
  0x36   :  { %1431 = vmatmul.mubr.f32.vlgmr.msra.gmra.mrb[0].mxu0 %v32_v39  ;;  %1667 = vmatprep.subr.bf16.mxu1 %v1666_v56 }
  0x37   :  { %1433 = vmatprep.mubr.f32.mxu0 %v33_v40 }
  0x39   :  { %1669 = vmatpush3.bf16.msra.mxu1 %v1666_v56 }
  0x3a   :  { %1434 = vmatmul.mubr.f32.gmra.mrb[2].mxu0 %v34_v44 }
  0x3b   :  { %1436 = vmatprep.mubr.f32.mxu0 %v35_v45 }
  0x3e   :  { %1437 = vmatmul.mubr.f32.gmra.mrb[4].mxu0 %v36_v49 }
  0x3f   :  { %1439 = vmatprep.mubr.f32.mxu0 %v37_v50 }
  0x42   :  { %1440 = vmatmul.mubr.f32.gmra.mrb[6].mxu0 %v38_v54 }
  0x43   :  { %1442 = vmatprep.mubr.f32.mxu0 %v39_v55 }
  0x46   :  { %1443 = vmatmul.mubr.f32.gmra.mrb[8].mxu0 %v40_v57 }
  0x47   :  { %1445 = vmatprep.mubr.f32.mxu0 %v41_v58 }
  0x4a   :  { %1446 = vmatmul.mubr.f32.gmra.mrb[10].mxu0 %v42_v59 }
  0x4b   :  { %1448 = vmatprep.mubr.f32.mxu0 %v43_v60 }
  0x4e   :  { %1449 = vmatmul.mubr.f32.gmra.mrb[12].mxu0 %v44_v61 }
  0x4f   :  { %1451 = vmatprep.mubr.f32.mxu0 %v45_v62 }
  0x52   :  { %1452 = vmatmul.mubr.f32.gmra.mrb[14].mxu0 %v46_v63 }
  0x53   :  { %1454 = vmatprep.mubr.f32.mxu0 %v47_v0 }
  0x56   :  { %1455 = vmatmul.mubr.f32.gmra.mrb[16].mxu0 %v48_v1 }
  0x57   :  { %1457 = vmatprep.mubr.f32.mxu0 %v49_v2 }
  0x5a   :  { %1458 = vmatmul.mubr.f32.gmra.mrb[18].mxu0 %v50_v3 }
  0x5b   :  { %1460 = vmatprep.mubr.f32.mxu0 %v51_v4 }
  0x5e   :  { %1461 = vmatmul.mubr.f32.gmra.mrb[20].mxu0 %v52_v5 }
  0x5f   :  { %1463 = vmatprep.mubr.f32.mxu0 %v53_v6 }
  0x62   :  { %1464 = vmatmul.mubr.f32.gmra.mrb[22].mxu0 %v54_v7 }
  0x63   :  { %1466 = vmatprep.mubr.f32.mxu0 %v55_v8 }
  0x66   :  { %1467 = vmatmul.mubr.f32.gmra.mrb[24].mxu0 %v56_v9 }
  0x67   :  { %1469 = vmatprep.mubr.f32.mxu0 %v57_v10 }
  0x6a   :  { %1470 = vmatmul.mubr.f32.gmra.mrb[26].mxu0 %v58_v11 }
  0x6b   :  { %1472 = vmatprep.mubr.f32.mxu0 %v59_v12 }
  0x6e   :  { %1473 = vmatmul.mubr.f32.gmra.mrb[28].mxu0 %v60_v13 }
  0x6f   :  { %1475 = vmatprep.mubr.f32.mxu0 %v61_v14 }
  0x72   :  { %1476 = vmatmul.mubr.f32.gmra.mrb[30].mxu0 %v62_v15 }
  0x73   :  { %1478 = vmatprep.mubr.f32.mxu0 %v63_v16 }
  0x76   :  { %1479 = vmatmul.mubr.f32.gmra.mrb[32].mxu0 %v64_v17 }
  0x77   :  { %1481 = vmatprep.mubr.f32.mxu0 %v65_v18 }
  0x7a   :  { %1482 = vmatmul.mubr.f32.gmra.mrb[34].mxu0 %v66_v19 }
  0x7b   :  { %1484 = vmatprep.mubr.f32.mxu0 %v67_v20 }
  0x7e   :  { %1485 = vmatmul.mubr.f32.gmra.mrb[36].mxu0 %v68_v21 }
  0x7f   :  { %1487 = vmatprep.mubr.f32.mxu0 %v69_v22 }
  0x82   :  { %1488 = vmatmul.mubr.f32.gmra.mrb[38].mxu0 %v70_v23 }
  0x83   :  { %1490 = vmatprep.mubr.f32.mxu0 %v71_v24 }
  0x86   :  { %1491 = vmatmul.mubr.f32.gmra.mrb[40].mxu0 %v72_v25 }
  0x87   :  { %1493 = vmatprep.mubr.f32.mxu0 %v73_v26 }
  0x8a   :  { %1494 = vmatmul.mubr.f32.gmra.mrb[42].mxu0 %v74_v27 }
  0x8b   :  { %1496 = vmatprep.mubr.f32.mxu0 %v75_v28 }
  0x8e   :  { %1497 = vmatmul.mubr.f32.gmra.mrb[44].mxu0 %v76_v29 }
  0x8f   :  { %1499 = vmatprep.mubr.f32.mxu0 %v77_v30 }
  0x92   :  { %1500 = vmatmul.mubr.f32.gmra.mrb[46].mxu0 %v78_v31 }
 0x109   :  { %v1432_v32 = vpop.f32.mrb[0].mxu0 }
 0x10a   :  { %v161_v33 = vpop.f32.mrb[1].mxu0 }
 0x10b   :  { %v1130_v34 = vpack.c.bf16 %v1432_v32, %v161_v33  ;;  %1534 = vmatprep.mubr.f32.mxu1 %v161_v33 }
 0x10c   :  { %1535 = vmatmul.mubr.f32.vlgmr.msra.gmra.mrb[0].mxu1 %v1432_v32 }
 0x10d   :  { %1131 = vst [vmem:[#allocation5] sm:$0xff] %v1130_v34   ;;  %v1435_v35 = vpop.f32.mrb[2].mxu0 }
 0x10e   :  { %v171_v36 = vpop.f32.mrb[3].mxu0 }
 0x10f   :  { %v1135_v37 = vpack.c.bf16 %v1435_v35, %v171_v36  ;;  %1537 = vmatprep.mubr.f32.mxu1 %v171_v36 }
 0x110   :  { %1538 = vmatmul.mubr.f32.gmra.mrb[2].mxu1 %v1435_v35 }
 0x111   :  { %1247 = vst [vmem:[#allocation5 + $0x8] sm:$0xff] %v1135_v37   ;;  %v1438_v38 = vpop.f32.mrb[4].mxu0 }
 0x112   :  { %v181_v39 = vpop.f32.mrb[5].mxu0 }
 0x113   :  { %v1140_v40 = vpack.c.bf16 %v1438_v38, %v181_v39  ;;  %1540 = vmatprep.mubr.f32.mxu1 %v181_v39 }
 0x114   :  { %1541 = vmatmul.mubr.f32.gmra.mrb[4].mxu1 %v1438_v38 }
 0x115   :  { %1248 = vst [vmem:[#allocation5 + $0x10] sm:$0xff] %v1140_v40   ;;  %v1441_v41 = vpop.f32.mrb[6].mxu0 }
 0x116   :  { %v191_v42 = vpop.f32.mrb[7].mxu0 }
 0x117   :  { %v1145_v43 = vpack.c.bf16 %v1441_v41, %v191_v42  ;;  %1543 = vmatprep.mubr.f32.mxu1 %v191_v42 }
 0x118   :  { %1544 = vmatmul.mubr.f32.gmra.mrb[6].mxu1 %v1441_v41 }
 0x119   :  { %1249 = vst [vmem:[#allocation5 + $0x18] sm:$0xff] %v1145_v43   ;;  %v1444_v44 = vpop.f32.mrb[8].mxu0 }
 0x11a   :  { %v201_v45 = vpop.f32.mrb[9].mxu0 }
 0x11b   :  { %v1150_v46 = vpack.c.bf16 %v1444_v44, %v201_v45  ;;  %1546 = vmatprep.mubr.f32.mxu1 %v201_v45 }
 0x11c   :  { %1547 = vmatmul.mubr.f32.gmra.mrb[8].mxu1 %v1444_v44 }
 0x11d   :  { %1250 = vst [vmem:[#allocation5 + $0x20] sm:$0xff] %v1150_v46   ;;  %v1447_v47 = vpop.f32.mrb[10].mxu0 }
 0x11e   :  { %v211_v48 = vpop.f32.mrb[11].mxu0 }
 0x11f   :  { %v1155_v49 = vpack.c.bf16 %v1447_v47, %v211_v48  ;;  %1549 = vmatprep.mubr.f32.mxu1 %v211_v48 }
 0x120   :  { %1550 = vmatmul.mubr.f32.gmra.mrb[10].mxu1 %v1447_v47 }
 0x121   :  { %1251 = vst [vmem:[#allocation5 + $0x28] sm:$0xff] %v1155_v49   ;;  %v1450_v50 = vpop.f32.mrb[12].mxu0 }
 0x122   :  { %v221_v51 = vpop.f32.mrb[13].mxu0 }
 0x123   :  { %v1160_v52 = vpack.c.bf16 %v1450_v50, %v221_v51  ;;  %1552 = vmatprep.mubr.f32.mxu1 %v221_v51 }
 0x124   :  { %1553 = vmatmul.mubr.f32.gmra.mrb[12].mxu1 %v1450_v50 }
 0x125   :  { %1252 = vst [vmem:[#allocation5 + $0x30] sm:$0xff] %v1160_v52   ;;  %v1453_v53 = vpop.f32.mrb[14].mxu0 }
 0x126   :  { %v231_v54 = vpop.f32.mrb[15].mxu0 }
 0x127   :  { %v1165_v55 = vpack.c.bf16 %v1453_v53, %v231_v54  ;;  %1555 = vmatprep.mubr.f32.mxu1 %v231_v54 }
 0x128   :  { %1556 = vmatmul.mubr.f32.gmra.mrb[14].mxu1 %v1453_v53 }
 0x129   :  { %1253 = vst [vmem:[#allocation5 + $0x38] sm:$0xff] %v1165_v55   ;;  %v1456_v56 = vpop.f32.mrb[16].mxu0 }
 0x12a   :  { %v241_v57 = vpop.f32.mrb[17].mxu0 }
 0x12b   :  { %v1170_v58 = vpack.c.bf16 %v1456_v56, %v241_v57  ;;  %1558 = vmatprep.mubr.f32.mxu1 %v241_v57 }
 0x12c   :  { %1559 = vmatmul.mubr.f32.gmra.mrb[16].mxu1 %v1456_v56 }
 0x12d   :  { %1254 = vst [vmem:[#allocation5 + $0x40] sm:$0xff] %v1170_v58   ;;  %v1459_v59 = vpop.f32.mrb[18].mxu0 }
 0x12e   :  { %v251_v60 = vpop.f32.mrb[19].mxu0 }
 0x12f   :  { %v1175_v61 = vpack.c.bf16 %v1459_v59, %v251_v60  ;;  %1561 = vmatprep.mubr.f32.mxu1 %v251_v60 }
 0x130   :  { %1562 = vmatmul.mubr.f32.gmra.mrb[18].mxu1 %v1459_v59 }
 0x131   :  { %1255 = vst [vmem:[#allocation5 + $0x48] sm:$0xff] %v1175_v61   ;;  %v1462_v62 = vpop.f32.mrb[20].mxu0 }
 0x132   :  { %v261_v63 = vpop.f32.mrb[21].mxu0 }
 0x133   :  { %v1180_v0 = vpack.c.bf16 %v1462_v62, %v261_v63  ;;  %1564 = vmatprep.mubr.f32.mxu1 %v261_v63 }
 0x134   :  { %1565 = vmatmul.mubr.f32.gmra.mrb[20].mxu1 %v1462_v62 }
 0x135   :  { %1256 = vst [vmem:[#allocation5 + $0x50] sm:$0xff] %v1180_v0   ;;  %v1465_v1 = vpop.f32.mrb[22].mxu0 }
 0x136   :  { %v271_v2 = vpop.f32.mrb[23].mxu0 }
 0x137   :  { %v1185_v3 = vpack.c.bf16 %v1465_v1, %v271_v2  ;;  %1567 = vmatprep.mubr.f32.mxu1 %v271_v2 }
 0x138   :  { %1568 = vmatmul.mubr.f32.gmra.mrb[22].mxu1 %v1465_v1 }
 0x139   :  { %1257 = vst [vmem:[#allocation5 + $0x58] sm:$0xff] %v1185_v3   ;;  %v1468_v4 = vpop.f32.mrb[24].mxu0 }
 0x13a   :  { %v281_v5 = vpop.f32.mrb[25].mxu0 }
 0x13b   :  { %v1190_v6 = vpack.c.bf16 %v1468_v4, %v281_v5  ;;  %1570 = vmatprep.mubr.f32.mxu1 %v281_v5 }
 0x13c   :  { %1571 = vmatmul.mubr.f32.gmra.mrb[24].mxu1 %v1468_v4 }
 0x13d   :  { %1258 = vst [vmem:[#allocation5 + $0x60] sm:$0xff] %v1190_v6   ;;  %v1471_v7 = vpop.f32.mrb[26].mxu0 }
 0x13e   :  { %v291_v8 = vpop.f32.mrb[27].mxu0 }
 0x13f   :  { %v1195_v9 = vpack.c.bf16 %v1471_v7, %v291_v8  ;;  %1573 = vmatprep.mubr.f32.mxu1 %v291_v8 }
 0x140   :  { %1574 = vmatmul.mubr.f32.gmra.mrb[26].mxu1 %v1471_v7 }
 0x141   :  { %1259 = vst [vmem:[#allocation5 + $0x68] sm:$0xff] %v1195_v9   ;;  %v1474_v10 = vpop.f32.mrb[28].mxu0 }
 0x142   :  { %v301_v11 = vpop.f32.mrb[29].mxu0 }
 0x143   :  { %v1200_v12 = vpack.c.bf16 %v1474_v10, %v301_v11  ;;  %1576 = vmatprep.mubr.f32.mxu1 %v301_v11 }
 0x144   :  { %1577 = vmatmul.mubr.f32.gmra.mrb[28].mxu1 %v1474_v10 }
 0x145   :  { %1260 = vst [vmem:[#allocation5 + $0x70] sm:$0xff] %v1200_v12   ;;  %v1477_v13 = vpop.f32.mrb[30].mxu0 }
 0x146   :  { %v311_v14 = vpop.f32.mrb[31].mxu0 }
 0x147   :  { %v1205_v15 = vpack.c.bf16 %v1477_v13, %v311_v14  ;;  %1579 = vmatprep.mubr.f32.mxu1 %v311_v14 }
 0x148   :  { %1580 = vmatmul.mubr.f32.gmra.mrb[30].mxu1 %v1477_v13 }
 0x149   :  { %1261 = vst [vmem:[#allocation5 + $0x78] sm:$0xff] %v1205_v15   ;;  %v1480_v16 = vpop.f32.mrb[32].mxu0 }
 0x14a   :  { %v321_v17 = vpop.f32.mrb[33].mxu0 }
 0x14b   :  { %v1210_v18 = vpack.c.bf16 %v1480_v16, %v321_v17  ;;  %1582 = vmatprep.mubr.f32.mxu1 %v321_v17 }
 0x14c   :  { %1583 = vmatmul.mubr.f32.gmra.mrb[32].mxu1 %v1480_v16 }
 0x14d   :  { %1262 = vst [vmem:[#allocation5 + $0x80] sm:$0xff] %v1210_v18   ;;  %v1483_v19 = vpop.f32.mrb[34].mxu0 }
 0x14e   :  { %v331_v20 = vpop.f32.mrb[35].mxu0 }
 0x14f   :  { %v1215_v21 = vpack.c.bf16 %v1483_v19, %v331_v20  ;;  %1585 = vmatprep.mubr.f32.mxu1 %v331_v20 }
 0x150   :  { %1586 = vmatmul.mubr.f32.gmra.mrb[34].mxu1 %v1483_v19 }
 0x151   :  { %1263 = vst [vmem:[#allocation5 + $0x88] sm:$0xff] %v1215_v21   ;;  %v1486_v22 = vpop.f32.mrb[36].mxu0 }
 0x152   :  { %v341_v23 = vpop.f32.mrb[37].mxu0 }
 0x153   :  { %v1220_v24 = vpack.c.bf16 %v1486_v22, %v341_v23  ;;  %1588 = vmatprep.mubr.f32.mxu1 %v341_v23 }
 0x154   :  { %1589 = vmatmul.mubr.f32.gmra.mrb[36].mxu1 %v1486_v22 }
 0x155   :  { %1264 = vst [vmem:[#allocation5 + $0x90] sm:$0xff] %v1220_v24   ;;  %v1489_v25 = vpop.f32.mrb[38].mxu0 }
 0x156   :  { %v351_v26 = vpop.f32.mrb[39].mxu0 }
 0x157   :  { %v1225_v27 = vpack.c.bf16 %v1489_v25, %v351_v26  ;;  %1591 = vmatprep.mubr.f32.mxu1 %v351_v26 }
 0x158   :  { %1592 = vmatmul.mubr.f32.gmra.mrb[38].mxu1 %v1489_v25 }
 0x159   :  { %1265 = vst [vmem:[#allocation5 + $0x98] sm:$0xff] %v1225_v27   ;;  %v1492_v28 = vpop.f32.mrb[40].mxu0 }
 0x15a   :  { %v361_v29 = vpop.f32.mrb[41].mxu0 }
 0x15b   :  { %v1230_v30 = vpack.c.bf16 %v1492_v28, %v361_v29  ;;  %1594 = vmatprep.mubr.f32.mxu1 %v361_v29 }
 0x15c   :  { %1595 = vmatmul.mubr.f32.gmra.mrb[40].mxu1 %v1492_v28 }
 0x15d   :  { %1266 = vst [vmem:[#allocation5 + $0xa0] sm:$0xff] %v1230_v30   ;;  %v1495_v31 = vpop.f32.mrb[42].mxu0 }
 0x15e   :  { %v371_v32 = vpop.f32.mrb[43].mxu0 }
 0x15f   :  { %v1235_v33 = vpack.c.bf16 %v1495_v31, %v371_v32  ;;  %1597 = vmatprep.mubr.f32.mxu1 %v371_v32 }
 0x160   :  { %1598 = vmatmul.mubr.f32.gmra.mrb[42].mxu1 %v1495_v31 }
 0x161   :  { %1267 = vst [vmem:[#allocation5 + $0xa8] sm:$0xff] %v1235_v33   ;;  %v1498_v34 = vpop.f32.mrb[44].mxu0 }
 0x162   :  { %v381_v35 = vpop.f32.mrb[45].mxu0 }
 0x163   :  { %v1240_v36 = vpack.c.bf16 %v1498_v34, %v381_v35  ;;  %1600 = vmatprep.mubr.f32.mxu1 %v381_v35 }
 0x164   :  { %1601 = vmatmul.mubr.f32.gmra.mrb[44].mxu1 %v1498_v34 }
 0x165   :  { %1268 = vst [vmem:[#allocation5 + $0xb0] sm:$0xff] %v1240_v36   ;;  %v1501_v37 = vpop.f32.mrb[46].mxu0 }
 0x166   :  { %v391_v38 = vpop.f32.mrb[47].mxu0 }
 0x167   :  { %v1245_v39 = vpack.c.bf16 %v1501_v37, %v391_v38  ;;  %1603 = vmatprep.mubr.f32.mxu1 %v391_v38 }
 0x168   :  { %1604 = vmatmul.mubr.f32.gmra.mrb[46].mxu1 %v1501_v37 }
 0x169   :  { %1269 = vst [vmem:[#allocation5 + $0xb8] sm:$0xff] %v1245_v39  }
 0x16a   :  { %1709 = shalt.err (!%p1706_p12)
}
 0x16b   :  { %s1710_s15 = scalar_lea.hbm %s2070_s3, 3072 }
 0x16c   :  { %p1711_p13 = scmp.ne.s32.totalorder %s2070_s3, %s1710_s15  ;;  %p1714_p0 = scmp.lt.u32.totalorder %s1710_s15, %s2070_s3 }
 0x16e   :  { %p1716_p1 = pnand %p1714_p0, %p1711_p13 }
 0x170   :  { %1719 = shalt.err (!%p1716_p1)
}
 0x171   :  { %s1728_s19 = smov 64   ;;  %s1729_s20 = smov 4   ;;  %vm961_vm0 = vcmask 64512  }
 0x172   :  { %1021 = dma.vmem_to_hbm [thread:$0]  %s1016_s11, 3072, %s2070_s3, [#allocation4], %s1728_s19, %s1728_s19, %s1729_s20  }
 0x1df   :  { %v1536_v40 = vpop.f32.mrb[0].mxu1 }
 0x1e0   :  { %963 = vst.msk [vmem:[%s2071_s4 + $0x8] sm:$0xff] %vm961_vm0, %v1536_v40  ;;  %v722_v41 = vpop.f32.mrb[1].mxu1 }
 0x1e1   :  { %962 = vst.msk [vmem:[%s2071_s4] sm:$0xff] %vm961_vm0, %v722_v41 }
 0x1e3   :  { %v1539_v42 = vpop.f32.mrb[2].mxu1 }
 0x1e4   :  { %965 = vst.msk [vmem:[%s2071_s4 + $0x18] sm:$0xff] %vm961_vm0, %v1539_v42  ;;  %v732_v43 = vpop.f32.mrb[3].mxu1 }
 0x1e5   :  { %964 = vst.msk [vmem:[%s2071_s4 + $0x10] sm:$0xff] %vm961_vm0, %v732_v43 }
 0x1e7   :  { %v1542_v44 = vpop.f32.mrb[4].mxu1 }
 0x1e8   :  { %967 = vst.msk [vmem:[%s2071_s4 + $0x28] sm:$0xff] %vm961_vm0, %v1542_v44  ;;  %v742_v45 = vpop.f32.mrb[5].mxu1 }
 0x1e9   :  { %966 = vst.msk [vmem:[%s2071_s4 + $0x20] sm:$0xff] %vm961_vm0, %v742_v45 }
 0x1eb   :  { %v1545_v46 = vpop.f32.mrb[6].mxu1 }
 0x1ec   :  { %969 = vst.msk [vmem:[%s2071_s4 + $0x38] sm:$0xff] %vm961_vm0, %v1545_v46  ;;  %v752_v47 = vpop.f32.mrb[7].mxu1 }
 0x1ed   :  { %968 = vst.msk [vmem:[%s2071_s4 + $0x30] sm:$0xff] %vm961_vm0, %v752_v47 }
 0x1ef   :  { %v1548_v48 = vpop.f32.mrb[8].mxu1 }
 0x1f0   :  { %971 = vst.msk [vmem:[%s2071_s4 + $0x48] sm:$0xff] %vm961_vm0, %v1548_v48  ;;  %v762_v49 = vpop.f32.mrb[9].mxu1 }
 0x1f1   :  { %970 = vst.msk [vmem:[%s2071_s4 + $0x40] sm:$0xff] %vm961_vm0, %v762_v49 }
 0x1f3   :  { %v1551_v50 = vpop.f32.mrb[10].mxu1 }
 0x1f4   :  { %973 = vst.msk [vmem:[%s2071_s4 + $0x58] sm:$0xff] %vm961_vm0, %v1551_v50  ;;  %v772_v51 = vpop.f32.mrb[11].mxu1 }
 0x1f5   :  { %972 = vst.msk [vmem:[%s2071_s4 + $0x50] sm:$0xff] %vm961_vm0, %v772_v51 }
 0x1f7   :  { %v1554_v52 = vpop.f32.mrb[12].mxu1 }
 0x1f8   :  { %975 = vst.msk [vmem:[%s2071_s4 + $0x68] sm:$0xff] %vm961_vm0, %v1554_v52  ;;  %v782_v53 = vpop.f32.mrb[13].mxu1 }
 0x1f9   :  { %974 = vst.msk [vmem:[%s2071_s4 + $0x60] sm:$0xff] %vm961_vm0, %v782_v53 }
 0x1fb   :  { %v1557_v54 = vpop.f32.mrb[14].mxu1 }
 0x1fc   :  { %977 = vst.msk [vmem:[%s2071_s4 + $0x78] sm:$0xff] %vm961_vm0, %v1557_v54  ;;  %v792_v55 = vpop.f32.mrb[15].mxu1 }
 0x1fd   :  { %976 = vst.msk [vmem:[%s2071_s4 + $0x70] sm:$0xff] %vm961_vm0, %v792_v55 }
 0x1ff   :  { %v1560_v56 = vpop.f32.mrb[16].mxu1 }
 0x200   :  { %979 = vst.msk [vmem:[%s2071_s4 + $0x88] sm:$0xff] %vm961_vm0, %v1560_v56  ;;  %v802_v57 = vpop.f32.mrb[17].mxu1 }
 0x201   :  { %978 = vst.msk [vmem:[%s2071_s4 + $0x80] sm:$0xff] %vm961_vm0, %v802_v57 }
 0x203   :  { %v1563_v58 = vpop.f32.mrb[18].mxu1 }
 0x204   :  { %981 = vst.msk [vmem:[%s2071_s4 + $0x98] sm:$0xff] %vm961_vm0, %v1563_v58  ;;  %v812_v59 = vpop.f32.mrb[19].mxu1 }
 0x205   :  { %980 = vst.msk [vmem:[%s2071_s4 + $0x90] sm:$0xff] %vm961_vm0, %v812_v59 }
 0x207   :  { %v1566_v60 = vpop.f32.mrb[20].mxu1 }
 0x208   :  { %983 = vst.msk [vmem:[%s2071_s4 + $0xa8] sm:$0xff] %vm961_vm0, %v1566_v60  ;;  %v822_v61 = vpop.f32.mrb[21].mxu1 }
 0x209   :  { %982 = vst.msk [vmem:[%s2071_s4 + $0xa0] sm:$0xff] %vm961_vm0, %v822_v61 }
 0x20b   :  { %v1569_v62 = vpop.f32.mrb[22].mxu1 }
 0x20c   :  { %985 = vst.msk [vmem:[%s2071_s4 + $0xb8] sm:$0xff] %vm961_vm0, %v1569_v62  ;;  %v832_v63 = vpop.f32.mrb[23].mxu1 }
 0x20d   :  { %984 = vst.msk [vmem:[%s2071_s4 + $0xb0] sm:$0xff] %vm961_vm0, %v832_v63 }
 0x20f   :  { %v1572_v0 = vpop.f32.mrb[24].mxu1 }
 0x210   :  { %987 = vst.msk [vmem:[%s2071_s4 + $0xc8] sm:$0xff] %vm961_vm0, %v1572_v0  ;;  %v842_v1 = vpop.f32.mrb[25].mxu1 }
 0x211   :  { %986 = vst.msk [vmem:[%s2071_s4 + $0xc0] sm:$0xff] %vm961_vm0, %v842_v1 }
 0x213   :  { %v1575_v2 = vpop.f32.mrb[26].mxu1 }
 0x214   :  { %989 = vst.msk [vmem:[%s2071_s4 + $0xd8] sm:$0xff] %vm961_vm0, %v1575_v2  ;;  %v852_v3 = vpop.f32.mrb[27].mxu1 }
 0x215   :  { %988 = vst.msk [vmem:[%s2071_s4 + $0xd0] sm:$0xff] %vm961_vm0, %v852_v3 }
 0x217   :  { %v1578_v4 = vpop.f32.mrb[28].mxu1 }
 0x218   :  { %991 = vst.msk [vmem:[%s2071_s4 + $0xe8] sm:$0xff] %vm961_vm0, %v1578_v4  ;;  %v862_v5 = vpop.f32.mrb[29].mxu1 }
 0x219   :  { %990 = vst.msk [vmem:[%s2071_s4 + $0xe0] sm:$0xff] %vm961_vm0, %v862_v5 }
 0x21b   :  { %v1581_v6 = vpop.f32.mrb[30].mxu1 }
 0x21c   :  { %993 = vst.msk [vmem:[%s2071_s4 + $0xf8] sm:$0xff] %vm961_vm0, %v1581_v6  ;;  %v872_v7 = vpop.f32.mrb[31].mxu1 }
 0x21d   :  { %992 = vst.msk [vmem:[%s2071_s4 + $0xf0] sm:$0xff] %vm961_vm0, %v872_v7 }
 0x21f   :  { %v1584_v8 = vpop.f32.mrb[32].mxu1 }
 0x220   :  { %995 = vst.msk [vmem:[%s2071_s4 + $0x108] sm:$0xff] %vm961_vm0, %v1584_v8  ;;  %v882_v9 = vpop.f32.mrb[33].mxu1 }
 0x221   :  { %994 = vst.msk [vmem:[%s2071_s4 + $0x100] sm:$0xff] %vm961_vm0, %v882_v9 }
 0x223   :  { %v1587_v10 = vpop.f32.mrb[34].mxu1 }
 0x224   :  { %997 = vst.msk [vmem:[%s2071_s4 + $0x118] sm:$0xff] %vm961_vm0, %v1587_v10  ;;  %v892_v11 = vpop.f32.mrb[35].mxu1 }
 0x225   :  { %996 = vst.msk [vmem:[%s2071_s4 + $0x110] sm:$0xff] %vm961_vm0, %v892_v11 }
 0x227   :  { %v1590_v12 = vpop.f32.mrb[36].mxu1 }
 0x228   :  { %999 = vst.msk [vmem:[%s2071_s4 + $0x128] sm:$0xff] %vm961_vm0, %v1590_v12  ;;  %v902_v13 = vpop.f32.mrb[37].mxu1 }
 0x229   :  { %998 = vst.msk [vmem:[%s2071_s4 + $0x120] sm:$0xff] %vm961_vm0, %v902_v13 }
 0x22b   :  { %v1593_v14 = vpop.f32.mrb[38].mxu1 }
 0x22c   :  { %1001 = vst.msk [vmem:[%s2071_s4 + $0x138] sm:$0xff] %vm961_vm0, %v1593_v14  ;;  %v912_v15 = vpop.f32.mrb[39].mxu1 }
 0x22d   :  { %1000 = vst.msk [vmem:[%s2071_s4 + $0x130] sm:$0xff] %vm961_vm0, %v912_v15 }
 0x22f   :  { %v1596_v16 = vpop.f32.mrb[40].mxu1 }
 0x230   :  { %1003 = vst.msk [vmem:[%s2071_s4 + $0x148] sm:$0xff] %vm961_vm0, %v1596_v16  ;;  %v922_v17 = vpop.f32.mrb[41].mxu1 }
 0x231   :  { %1002 = vst.msk [vmem:[%s2071_s4 + $0x140] sm:$0xff] %vm961_vm0, %v922_v17 }
 0x233   :  { %v1599_v18 = vpop.f32.mrb[42].mxu1 }
 0x234   :  { %1005 = vst.msk [vmem:[%s2071_s4 + $0x158] sm:$0xff] %vm961_vm0, %v1599_v18  ;;  %v932_v19 = vpop.f32.mrb[43].mxu1 }
 0x235   :  { %1004 = vst.msk [vmem:[%s2071_s4 + $0x150] sm:$0xff] %vm961_vm0, %v932_v19 }
 0x237   :  { %v1602_v20 = vpop.f32.mrb[44].mxu1 }
 0x238   :  { %1007 = vst.msk [vmem:[%s2071_s4 + $0x168] sm:$0xff] %vm961_vm0, %v1602_v20  ;;  %v942_v21 = vpop.f32.mrb[45].mxu1 }
 0x239   :  { %1006 = vst.msk [vmem:[%s2071_s4 + $0x160] sm:$0xff] %vm961_vm0, %v942_v21 }
 0x23b   :  { %v1605_v22 = vpop.f32.mrb[46].mxu1 }
 0x23c   :  { %1009 = vst.msk [vmem:[%s2071_s4 + $0x178] sm:$0xff] %vm961_vm0, %v1605_v22  ;;  %v952_v23 = vpop.f32.mrb[47].mxu1 }
 0x23d   :  { %1008 = vst.msk [vmem:[%s2071_s4 + $0x170] sm:$0xff] %vm961_vm0, %v952_v23 }
 0x23e   :  { %1722 = dma.done.wait [#allocation4], 3072  }
 0x23f   :  { %1723 = vsyncadd [#allocation4], 4294964224 }
 0x240   :  { %1029 = vsyncpa [#allocation3], 1 }
 0x241   :  { %1030 = vsyncpa [#allocation4], 1 }

</bundles_post_ra>
